<compile_context>
chip_gen: v7x
topology: tpu7x:2x2x1
jax: 0.10.0
libtpu: 0.0.40
codegen_flags: <defaults>
</compile_context>

<pallas_src>
import functools

import jax
import jax.numpy as jnp
from jax import lax
from jax.experimental import pallas as pl
from jax.experimental.pallas import tpu as pltpu

_LANES = 128
_SUBLANES = 8


def _round_up(a: int, b: int) -> int:
    return -(-a // b) * b


def _tpu_vmem_capacity_bytes() -> int:
    """Best-effort VMEM capacity query; conservative (v7x-sized) fallback."""
    try:
        info = pltpu.get_tpu_info()
        cap = getattr(info, "vmem_capacity_bytes", None)
        if isinstance(cap, int) and cap > 0:
            return cap
    except Exception:
        pass
    return 64 * 1024 * 1024


def _ln_lane_dense_kernel(x_ref, m_ref, w_ref, b_ref, o_ref, *, eps, inv_c):
    """Lane-dense path: each 128-lane row packs 128//C original rows.

    x_ref/o_ref: (tr, 128); m_ref: (128, 128) block-diagonal ones (f32);
    w_ref/b_ref: (1, 128) f32 (weight/bias tiled 128//C times).
    """
    x = x_ref[...].astype(jnp.float32)
    m = m_ref[...]
    # Segmented (per-C-lane-group) sums via MXU matmul: the result is already
    # broadcast back to every lane of its group.  HIGHEST precision keeps f32
    # accuracy; the MXU is idle in this mem-bound kernel so the passes are free.
    mu = jnp.dot(x, m, precision=lax.Precision.HIGHEST,
                 preferred_element_type=jnp.float32) * inv_c
    xc = x - mu
    var = jnp.dot(xc * xc, m, precision=lax.Precision.HIGHEST,
                  preferred_element_type=jnp.float32) * inv_c
    inv = lax.rsqrt(var + eps)                      # EUP slot
    o_ref[...] = (xc * inv * w_ref[...] + b_ref[...]).astype(o_ref.dtype)


def _ln_rowwise_kernel(x_ref, w_ref, b_ref, o_ref, *, eps):
    """Fallback path: (tr, C) tiles, XLU cross-lane reduce per row."""
    x = x_ref[...].astype(jnp.float32)
    mu = jnp.mean(x, axis=-1, keepdims=True)
    xc = x - mu
    var = jnp.mean(xc * xc, axis=-1, keepdims=True)  # biased (unbiased=False)
    inv = lax.rsqrt(var + eps)
    o_ref[...] = (xc * inv * w_ref[...] + b_ref[...]).astype(o_ref.dtype)


def with_bias_layernorm(x, weight, bias, *, eps=1e-5, vmem_block_bytes=None):
    """Pallas TPU implementation of WithBias_LayerNorm.forward.

    x:      (..., C)  — normalized over the last axis
    weight: (C,)
    bias:   (C,)
    """
    orig_shape = x.shape
    C = int(orig_shape[-1])
    assert weight.shape == (C,) and bias.shape == (C,)

    R = 1
    for d in orig_shape[:-1]:
        R *= int(d)

    vmem_cap = _tpu_vmem_capacity_bytes()
    small_vmem = vmem_cap <= 64 * 1024 * 1024        # v7x-class (also multi-TC)
    if vmem_block_bytes is None:
        # Bigger tiles on 128 MiB parts (v5e/v6e); conservative on v7x so the
        # double-buffered in/out tiles + f32 temporaries stay well clear of VMEM.
        vmem_block_bytes = (2 if small_vmem else 8) * 1024 * 1024
    vmem_limit = (48 if small_vmem else 64) * 1024 * 1024

    # Affine tail is done in f32 (single cast at the store); pre-cast params
    # in the wrapper so the kernel does no per-step casting of invariants.
    w_f32 = weight.astype(jnp.float32)
    b_f32 = bias.astype(jnp.float32)

    lane_dense = (C < _LANES) and (_LANES % C == 0) and ((R * C) % _LANES == 0)

    if lane_dense:
        groups = _LANES // C
        rows = (R * C) // _LANES
        lane_cols = _LANES
        x2 = x.reshape(rows, _LANES)                 # contiguous reshape: free
        w2 = jnp.tile(w_f32, groups).reshape(1, _LANES)
        b2 = jnp.tile(b_f32, groups).reshape(1, _LANES)
        grp = jnp.arange(_LANES, dtype=jnp.int32) // C
        m = (grp[:, None] == grp[None, :]).astype(jnp.float32)  # block-diag ones
    else:
        rows = R
        lane_cols = C
        x2 = x.reshape(rows, C)
        w2 = w_f32.reshape(1, C)
        b2 = b_f32.reshape(1, C)

    # --- Row-tile selection -------------------------------------------------
    # Budget per row: double-buffered input + output tiles (at the I/O dtype)
    # plus ~4 f32 in-kernel temporaries, all at the lane-padded width.
    c_pad = _round_up(lane_cols, _LANES)
    bytes_per_row = c_pad * (2 * x.dtype.itemsize + 2 * x.dtype.itemsize + 4 * 4)
    if rows <= _SUBLANES:
        tr = rows                                     # tiny input: one full block
    else:
        tr_budget = max(_SUBLANES,
                        (vmem_block_bytes // bytes_per_row) // _SUBLANES * _SUBLANES)
        tr = min(tr_budget, (rows // _SUBLANES) * _SUBLANES)
        # Multi-TensorCore parts (v7x): ensure >=2 grid steps so the single
        # "parallel" axis can shard across cores.  Skipped on v5e/v6e.
        if small_vmem and rows > 2 * _SUBLANES and pl.cdiv(rows, tr) == 1:
            tr = _round_up(pl.cdiv(rows, 2), _SUBLANES)

    grid = pl.cdiv(rows, tr)   # ragged last block is masked by Pallas (no pad)

    if lane_dense:
        kernel = functools.partial(_ln_lane_dense_kernel,
                                   eps=float(eps), inv_c=1.0 / C)
        in_specs = [
            pl.BlockSpec((tr, _LANES), lambda i: (i, 0)),
            pl.BlockSpec((_LANES, _LANES), lambda i: (0, 0)),
            pl.BlockSpec((1, _LANES), lambda i: (0, 0)),
            pl.BlockSpec((1, _LANES), lambda i: (0, 0)),
        ]
        operands = (x2, m, w2, b2)
    else:
        kernel = functools.partial(_ln_rowwise_kernel, eps=float(eps))
        in_specs = [
            pl.BlockSpec((tr, C), lambda i: (i, 0)),
            pl.BlockSpec((1, C), lambda i: (0, 0)),
            pl.BlockSpec((1, C), lambda i: (0, 0)),
        ]
        operands = (x2, w2, b2)

    out = pl.pallas_call(
        kernel,
        out_shape=jax.ShapeDtypeStruct((rows, lane_cols), x.dtype),
        grid_spec=pltpu.PrefetchScalarGridSpec(
            num_scalar_prefetch=0,
            grid=(grid,),
            in_specs=in_specs,
            out_specs=pl.BlockSpec((tr, lane_cols), lambda i: (i, 0)),
        ),
        compiler_params=pltpu.CompilerParams(
            dimension_semantics=("parallel",),
            vmem_limit_bytes=vmem_limit,
        ),
    )(*operands)

    return out.reshape(orig_shape)


if __name__ == "__main__":
    key = jax.random.PRNGKey(0)
    kx, kw, kb = jax.random.split(key, 3)

    def check(name, y, x, w, b, eps=1e-5):
        y = jax.block_until_ready(y)
        mu = jnp.mean(x, axis=-1, keepdims=True)
        var = jnp.mean((x - mu) ** 2, axis=-1, keepdims=True)
        y_ref = (x - mu) / jnp.sqrt(var + eps) * w + b
        assert y.shape == x.shape and y.dtype == x.dtype
        err = float(jnp.max(jnp.abs(y - y_ref)))
        assert jnp.allclose(y, y_ref, atol=3e-5, rtol=3e-5), f"{name} mismatch: {err}"

    # Case 1: ShuffleMixer applies this LayerNorm to (B, H*W, C) channel-last
    # tokens; C=32 -> lane-dense MXU path, one (or two, on multi-core) steps.
    C = 32
    x1 = jax.random.normal(kx, (2, 64, C), dtype=jnp.float32)
    w1 = 1.0 + 0.1 * jax.random.normal(kw, (C,), dtype=jnp.float32)
    b1 = 0.1 * jax.random.normal(kb, (C,), dtype=jnp.float32)
    check("case1", with_bias_layernorm(x1, w1, b1), x1, w1, b1)

    # Case 2: lane-dense path with a tiny tile budget -> multi-step grid and a
    # ragged (masked) last block; exercises the no-pad cdiv path.
    x2 = jax.random.normal(kx, (2, 60, C), dtype=jnp.float32)
    check("case2", with_bias_layernorm(x2, w1, b1, vmem_block_bytes=32 * 1024),
          x2, w1, b1)

    # Case 3: C=48 does not divide 128 -> row-wise fallback path, ragged grid.
    C3 = 48
    x3 = jax.random.normal(kx, (2, 17, C3), dtype=jnp.float32)
    w3 = 1.0 + 0.1 * jax.random.normal(kw, (C3,), dtype=jnp.float32)
    b3 = 0.1 * jax.random.normal(kb, (C3,), dtype=jnp.float32)
    check("case3", with_bias_layernorm(x3, w3, b3, vmem_block_bytes=32 * 1024),
          x3, w3, b3)

    print("KERNEL_OK")
</pallas_src>

<mosaic_0001>
module attributes {stable_mosaic.version = 11 : i64} {
  func.func @_ln_lane_dense_kernel(%arg0: i32, %arg1: memref<16x128xf32, #tpu.memory_space<vmem>>, %arg2: memref<128x128xf32, #tpu.memory_space<vmem>>, %arg3: memref<1x128xf32, #tpu.memory_space<vmem>>, %arg4: memref<1x128xf32, #tpu.memory_space<vmem>>, %arg5: memref<16x128xf32, #tpu.memory_space<vmem>>) attributes {dimension_semantics = [#tpu.dimension_semantics<parallel>], iteration_bounds = array<i64: 2>, scalar_prefetch = 0 : i64, scratch_operands = 0 : i64, tpu.core_type = #tpu.core_type<tc>, window_params = [{transform_indices = @transform_0, window_bounds = array<i64: 16, 128>}, {pipeline_mode = #tpu.pipeline_mode<synchronous>, transform_indices = @transform_1, window_bounds = array<i64: 128, 128>}, {pipeline_mode = #tpu.pipeline_mode<synchronous>, transform_indices = @transform_2, window_bounds = array<i64: 1, 128>}, {pipeline_mode = #tpu.pipeline_mode<synchronous>, transform_indices = @transform_3, window_bounds = array<i64: 1, 128>}, {transform_indices = @transform_4, window_bounds = array<i64: 16, 128>}]} {
    %c0 = arith.constant 0 : index
    %c0_0 = arith.constant 0 : index
    %0 = vector.load %arg1[%c0, %c0_0] : memref<16x128xf32, #tpu.memory_space<vmem>>, vector<16x128xf32>
    %c0_1 = arith.constant 0 : index
    %c0_2 = arith.constant 0 : index
    %1 = vector.load %arg2[%c0_1, %c0_2] : memref<128x128xf32, #tpu.memory_space<vmem>>, vector<128x128xf32>
    %cst = arith.constant dense<0.000000e+00> : vector<16x128xf32>
    %2 = tpu.matmul %0, %1, %cst {dimension_numbers = #tpu.dot_dimension_numbers<[1], [0], [0], [1], [0, 0, 1, 1], [], []>, precision = #tpu.contract_precision<fp32>} : vector<16x128xf32>, vector<128x128xf32>, vector<16x128xf32> -> vector<16x128xf32>
    %cst_3 = arith.constant 3.125000e-02 : f32
    %3 = vector.broadcast %cst_3 : f32 to vector<16x128xf32>
    %4 = arith.mulf %2, %3 : vector<16x128xf32>
    %5 = arith.subf %0, %4 : vector<16x128xf32>
    %6 = arith.mulf %5, %5 : vector<16x128xf32>
    %cst_4 = arith.constant dense<0.000000e+00> : vector<16x128xf32>
    %7 = tpu.matmul %6, %1, %cst_4 {dimension_numbers = #tpu.dot_dimension_numbers<[1], [0], [0], [1], [0, 0, 1, 1], [], []>, precision = #tpu.contract_precision<fp32>} : vector<16x128xf32>, vector<128x128xf32>, vector<16x128xf32> -> vector<16x128xf32>
    %cst_5 = arith.constant 3.125000e-02 : f32
    %8 = vector.broadcast %cst_5 : f32 to vector<16x128xf32>
    %9 = arith.mulf %7, %8 : vector<16x128xf32>
    %cst_6 = arith.constant 9.99999974E-6 : f32
    %10 = vector.broadcast %cst_6 : f32 to vector<16x128xf32>
    %11 = arith.addf %9, %10 : vector<16x128xf32>
    %12 = math.rsqrt %11 : vector<16x128xf32>
    %13 = arith.mulf %5, %12 : vector<16x128xf32>
    %c0_7 = arith.constant 0 : index
    %c0_8 = arith.constant 0 : index
    %14 = vector.load %arg3[%c0_7, %c0_8] : memref<1x128xf32, #tpu.memory_space<vmem>>, vector<1x128xf32>
    %15 = vector.broadcast %14 : vector<1x128xf32> to vector<16x128xf32>
    %16 = arith.mulf %13, %15 : vector<16x128xf32>
    %c0_9 = arith.constant 0 : index
    %c0_10 = arith.constant 0 : index
    %17 = vector.load %arg4[%c0_9, %c0_10] : memref<1x128xf32, #tpu.memory_space<vmem>>, vector<1x128xf32>
    %18 = vector.broadcast %17 : vector<1x128xf32> to vector<16x128xf32>
    %19 = arith.addf %16, %18 : vector<16x128xf32>
    %c0_11 = arith.constant 0 : index
    %c0_12 = arith.constant 0 : index
    %20 = vector.load %arg5[%c0_11, %c0_12] : memref<16x128xf32, #tpu.memory_space<vmem>>, vector<16x128xf32>
    tpu.vector_store %arg5[%c0_11, %c0_12], %19 {strides = array<i32>} : memref<16x128xf32, #tpu.memory_space<vmem>>, vector<16x128xf32>,
    return
  }
  func.func @transform_0(%arg0: i32) -> (i32, i32) {
    %c0_i32 = arith.constant 0 : i32
    %c0_i32_0 = arith.constant 0 : i32
    return %arg0, %c0_i32 : i32, i32
  }
  func.func @transform_1(%arg0: i32) -> (i32, i32) {
    %c0_i32 = arith.constant 0 : i32
    %c0_i32_0 = arith.constant 0 : i32
    %c0_i32_1 = arith.constant 0 : i32
    return %c0_i32, %c0_i32_0 : i32, i32
  }
  func.func @transform_2(%arg0: i32) -> (i32, i32) {
    %c0_i32 = arith.constant 0 : i32
    %c0_i32_0 = arith.constant 0 : i32
    %c0_i32_1 = arith.constant 0 : i32
    return %c0_i32, %c0_i32_0 : i32, i32
  }
  func.func @transform_3(%arg0: i32) -> (i32, i32) {
    %c0_i32 = arith.constant 0 : i32
    %c0_i32_0 = arith.constant 0 : i32
    %c0_i32_1 = arith.constant 0 : i32
    return %c0_i32, %c0_i32_0 : i32, i32
  }
  func.func @transform_4(%arg0: i32) -> (i32, i32) {
    %c0_i32 = arith.constant 0 : i32
    %c0_i32_0 = arith.constant 0 : i32
    return %arg0, %c0_i32 : i32, i32
  }
}

</mosaic_0001>

<bundles_post_ra>
// kernel: tpu_custom_call.1
= control target key start
LH: loop header
LB: loop body
LE: loop exit
PB: predicated region body
PF: predicated region fallthrough
CT: control target
= control target key end

     0   :  { %9 = vsyncpa [#allocation3], 0  ;;  %s3697_s0 = inlined_call_operand.hbm [shape: f32[32,128], index: 0, kind: input, shape index: {}]   ;;  %s3698_s1 = inlined_call_operand.hbm [shape: f32[128,128], index: 1, kind: input, shape index: {}]   ;;  %s3699_s2 = inlined_call_operand.vmem [shape: f32[1,128], index: 2, kind: input, shape index: {}]   ;;  %s3700_s3 = inlined_call_operand.vmem [shape: f32[1,128], index: 3, kind: input, shape index: {}]   ;;  %s3701_s4 = inlined_call_operand.hbm [shape: f32[32,128], index: 4, kind: output, shape index: {}]  }
   0x1   :  { %11 = vsyncpa [#allocation3 + $0x1], 0 }
   0x2   :  { %12 = vsyncpa [#allocation6], 0 }
   0x3   :  { %13 = vsyncpa [#allocation4], 0 }
   0x4   :  { %15 = vsyncpa [#allocation4 + $0x1], 0  ;;  %s3037_s15 = smov 0   ;;  %s3039_s16 = smov 0  }
   0x5   :  { %s3041_s17 = smov 0   ;;  %s3043_s18 = smov 0  }
   0x6 LB: > { %s3058_s19 = sadd.s32 4294967295, %s3003_s18   ;;  %s1750_s20 = sadd.s32 4294967294, %s3003_s18   ;;  %s3003_s18 = sphi %s3043_s18, %s3721_s18   ;;  %s2999_s17 = sphi %s3041_s17, %s3720_s17   ;;  %s2995_s16 = sphi %s3039_s16, %s3719_s16   ;;  %s2991_s15 = sphi %s3037_s15, %s3718_s15  }
   0x7   : > { %p41_p0 = scmp.ne.s32.totalorder %s2995_s16, %s2991_s15  ;;  %p3702_p1 = scmp.eq.s32.totalorder %s3058_s19, 0 }
   0x8   : > { %p134_p3 = scmp.eq.s32.totalorder %s1750_s20, 1  ;;  %p1751_p5 = scmp.ge.s32.totalorder %s3003_s18, 1 }
   0x9   : > { %p3067_p4 = por %p3702_p1, %p41_p0  ;;  %p141_p7 = scmp.lt.s32.totalorder %s3003_s18, 3 }
   0xa   : > { %p3072_p6 = por %p134_p3, %p41_p0  ;;  %s3005_s24 = smov [#allocation5]  }
   0xb   : > { %s3705_s21 = scalar_select %p3067_p4, 1, 0 }
   0xc   : > { %s3706_s22 = scalar_select %p3072_p6, 1, 0 }
   0xd   : > { %p3077_p8 = pnand %p1751_p5, %p141_p7  ;;  %s153_s25 = sshll.u32 %s3005_s24, 4  ;;  %s3081_s25 = int_to_ptr.vmem [resolvable:$true] %s153_s25 }
   0xe   : > { %s3093_s27 = sadd.s32 1, %s3003_s18   ;;  %s28_s28 = sadd.s32 1, %s2999_s17 }
   0xf   : > { %s3707_s23 = scalar_select %p3077_p8, 1, 0 }
  0x10   : > { %p2818_p9 = pneg %p3077_p8  ;;  %s25_s29 = ssub.s32 %s3003_s18, %s3093_s27 }
  0x11   : > { %s2875_s6 = scalar_lea.hbm %s3698_s1, 2048 }
  0x12   : > { %p3088_p11 = pnand %p2818_p9, %p3702_p1  ;;  %p2876_p12 = scmp.ne.s32.totalorder %s3698_s1, %s2875_s6 }
  0x13   : > { %p2882_p5 = scmp.lt.u32.totalorder %s2875_s6, %s3698_s1 }
  0x14   : > { %p2877_p13 = pneg %p3088_p11 }
  0x16   : > { %p2878_p0 = pnand %p2877_p13, %p2876_p12 }
  0x18   : > { %p2879_p3 = pneg %p2878_p0 }
  0x1a   : > { %p2884_p7 = pnand %p2882_p5, %p2879_p3 }
  0x1c   : > { %2887 = shalt.err (!%p2884_p7)
}
  0x1d   : > { %s2888_s11 = scalar_lea.vmem %s3081_s25, 2048  ;;  %p2896_p2 = scmp.lt.s32.totalorder %s3081_s25, %s3081_s25 }
  0x1e   : > { %p2889_p9 = scmp.ne.s32.totalorder %s3081_s25, %s2888_s11  ;;  %p2897_p6 = scmp.lt.s32.totalorder %s2888_s11, %s2888_s11 }
  0x20   : > { %p2891_p10 = pnand %p2889_p9, %p2877_p13  ;;  %p2898_p4 = por %p2897_p6, %p2896_p2 }
  0x22   : > { %p2892_p1 = pneg %p2891_p10 }
  0x24   : > { %p2899_p8 = pnand %p2898_p4, %p2892_p1 }
  0x26   : > { %2902 = shalt.err (!%p2899_p8)
}
  0x27   : > { %s3006_s12 = smov 128   ;;  %s3007_s13 = smov 8  }
  0x28   : > { %2821 = dma.hbm_to_vmem [thread:$0]  (!%p3088_p11), %s3698_s1, 2048, %s3081_s25, [#allocation6], %s3006_s12, %s3006_s12, %s3007_s13  }
  0x29   : > { %p26_p1 = scmp.eq.s32.totalorder %s25_s29, 0  ;;  %p35_p2 = scmp.ne.s32.totalorder %s2999_s17, %s2995_s16 }
  0x2a   : > { %p36_p4 = scmp.eq.s32.totalorder %s3003_s18, 0  ;;  %p2831_p6 = scmp.lt.s32.totalorder %s3003_s18, 2 }
  0x2b   : > { %s3127_s24 = scalar_select %p26_p1, %s2999_s17, %s28_s28  }
  0x2c   : > { %p37_p8 = por %p36_p4, %p35_p2  ;;  %p3709_p10 = scmp.eq.s32.totalorder %s3058_s19, 1 }
  0x2d   : > { %s173_s26 = sand.u32 1, %s2999_s17   ;;  %s1768_s5 = sshll.u32 %s3003_s18, 8 }
  0x2e   : > { %p3131_p12 = por %p3709_p10, %p35_p2  ;;  %s1754_s6 = sshll.u32 %s173_s26, 4 }
  0x2f   : > { %s3140_s9 = scalar_lea.hbm %s3697_s0, %s1768_s5  ;;  %s177_s25 = scalar_lea.vmem [#allocation2], %s1754_s6 }
  0x30   : > { %s184_s28 = sshll.u32 %s177_s25, 4  ;;  %p3142_p11 = pnand %p2831_p6, %p37_p8  ;;  %s3146_s28 = int_to_ptr.vmem [resolvable:$true] %s184_s28 }
  0x31   : > { %s3148_s10 = scalar_lea.sflag [#allocation3], %s173_s26  ;;  %s2903_s11 = scalar_lea.hbm %s3140_s9, 256 }
  0x32   : > { %p2904_p13 = scmp.ne.s32.totalorder %s3140_s9, %s2903_s11  ;;  %p2905_p0 = pneg %p3142_p11 }
  0x33   : > { %s2908_s5 = scalar_lea.hbm %s3697_s0, 512  ;;  %p2909_p7 = scmp.lt.u32.totalorder %s3140_s9, %s3697_s0 }
  0x34   : > { %p2906_p3 = pnand %p2905_p0, %p2904_p13  ;;  %p2910_p9 = scmp.lt.u32.totalorder %s2908_s5, %s2903_s11 }
  0x35   : > { %p2912_p2 = scmp.lt.u32.totalorder %s2903_s11, %s3140_s9 }
  0x36   : > { %p2907_p5 = pneg %p2906_p3  ;;  %p2911_p1 = por %p2910_p9, %p2909_p7 }
  0x38   : > { %p2913_p4 = por %p2912_p2, %p2911_p1 }
  0x3a   : > { %p2914_p6 = pnand %p2913_p4, %p2907_p5 }
  0x3c   : > { %2917 = shalt.err (!%p2914_p6)
}
  0x3d   : > { %s2918_s26 = scalar_lea.vmem %s3146_s28, 256  ;;  %s3008_s8 = smov [#allocation2]  }
  0x3e   : > { %p2919_p8 = scmp.ne.s32.totalorder %s3146_s28, %s2918_s26  ;;  %s2923_s25 = sshll.u32 %s3008_s8, 4  ;;  %s2924_s25 = int_to_ptr.vmem [resolvable:$false] %s2923_s25 }
  0x3f   : > { %s2925_s14 = scalar_lea.vmem %s2924_s25, 512  ;;  %p2926_p3 = scmp.lt.s32.totalorder %s3146_s28, %s2924_s25 }
  0x40   : > { %p2921_p10 = pnand %p2919_p8, %p2905_p0  ;;  %p2927_p7 = scmp.lt.s32.totalorder %s2925_s14, %s2918_s26 }
  0x42   : > { %p2922_p13 = pneg %p2921_p10  ;;  %p2928_p9 = por %p2927_p7, %p2926_p3 }
  0x44   : > { %p2929_p1 = pnand %p2928_p9, %p2922_p13 }
  0x46   : > { %2932 = shalt.err (!%p2929_p1)
}
  0x47   : > { %2825 = dma.hbm_to_vmem [thread:$0]  (!%p3142_p11), %s3140_s9, 256, %s3146_s28, %s3148_s10, %s3006_s12, %s3006_s12, %s3007_s13  }
  0x48   : > { %p3712_p0 = scmp.ne.s32.totalorder %s3707_s23, 0 }
  0x49   : > { %s3182_s11 = sand.u32 (!%p3712_p0), 1, %s2995_s16   ;;  %p3713_p5 = scmp.ne.s32.totalorder (!%p3712_p0), %s3705_s21, 0 }
  0x4a   : > { %196 = sbr.rel (%p3712_p0) target bundleno = 921 (0x399), region = 36  ;;  %s1758_s20 = sshll.u32 (!%p3712_p0), %s3182_s11, 4 }
  0x4b   : > { %s199_s5 = scalar_lea.sflag (!%p3712_p0), [#allocation3], %s3182_s11  ;;  %s3188_s29 = scalar_lea.vmem (!%p3712_p0), [#allocation2], %s1758_s20 }
  0x51   : > { %2978 = dma.done.wait (%p3713_p5), %s199_s5, 256  }
  0x52   : > { %2980 = vsyncadd (%p3713_p5), %s199_s5, 4294967040  ;;  %p3714_p11 = scmp.eq.s32.totalorder %s3058_s19, 0 }
  0x54   : > { %2982 = dma.done.wait (%p3714_p11), [#allocation6], 2048   ;;  %p3715_p2 = pmov %p3714_p11 }
  0x55   : > { %v235_v0 = vld [vmem:[#allocation5] sm:$0xff]  ;;  %v236_v1 = vld [vmem:[#allocation5 + $0x8] sm:$0xff]  ;;  %v237_v2 = vld [vmem:[#allocation5 + $0x10] sm:$0xff]  ;;  %s1769_s9 = sshll.u32 %s3058_s19, 8  ;;  %s230_s28 = scalar_lea.vmem [#allocation7], %s1758_s20 }
  0x56   : > { %2984 = vsyncadd (%p3715_p2), [#allocation6], 4294965248  ;;  %v252_v3 = vand.u32 4294901760, %v235_v0  ;;  %v255_v4 = vand.u32 4294901760, %v236_v1  ;;  %v238_v5 = vld [vmem:[#allocation5 + $0x18] sm:$0xff]  ;;  %v258_v6 = vand.u32 4294901760, %v237_v2  ;;  %s3651_s26 = scalar_lea.hbm %s3701_s4, %s1769_s9 }
  0x57   : > { %v239_v7 = vld [vmem:[#allocation5 + $0x20] sm:$0xff]  ;;  %v3198_v8 = vld [vmem:[#allocation5 + $0x28] sm:$0xff]  ;;  %v261_v9 = vand.u32 4294901760, %v238_v5  ;;  %v3205_v14 = vld [vmem:[#allocation5 + $0x30] sm:$0xff]  ;;  %s1667_s10 = sshll.u32 %s230_s28, 4  ;;  %s1654_s19 = scalar_lea.sflag [#allocation4], %s3182_s11  ;;  %s3653_s10 = int_to_ptr.vmem [resolvable:$true] %s1667_s10 }
  0x58   : > { %v3200_v10 = vpack.c.bf16 %v255_v4, %v252_v3  ;;  %v264_v11 = vand.u32 4294901760, %v239_v7  ;;  %v267_v12 = vand.u32 4294901760, %v3198_v8  ;;  %v3207_v15 = vld [vmem:[#allocation5 + $0x38] sm:$0xff]  ;;  %v3211_v16 = vld [vmem:[%s3188_s29] sm:$0xff]  ;;  %v270_v19 = vand.u32 4294901760, %v3205_v14  ;;  %v3226_v22 = vld [vmem:[#allocation5 + $0x48] sm:$0xff] }
  0x59   : > { %v3203_v13 = vpack.c.bf16 %v261_v9, %v258_v6  ;;  %v3216_v17 = vand.u32 4294901760, %v3211_v16  ;;  %v273_v20 = vand.u32 4294901760, %v3207_v15  ;;  %v3224_v21 = vld [vmem:[#allocation5 + $0x40] sm:$0xff]  ;;  %v3235_v25 = vsub.f32 %v235_v0, %v252_v3  ;;  %v3240_v27 = vld [vmem:[%s3188_s29 + $0x8] sm:$0xff]  ;;  %v245_v31 = vld [vmem:[#allocation5 + $0x50] sm:$0xff]  ;;  %s2933_s8 = scalar_lea.vmem %s3653_s10, 256 }
  0x5a   : > { %2407 = vmatprep.subr.bf16.mxu0 %v3200_v10  ;;  %2599 = vmatprep.subr.bf16.mxu1 %v3200_v10  ;;  %v3220_v18 = vpack.c.bf16 %v267_v12, %v264_v11  ;;  %v3237_v26 = vsub.f32 %v236_v1, %v255_v4  ;;  %v276_v29 = vand.u32 4294901760, %v3224_v21  ;;  %v279_v30 = vand.u32 4294901760, %v3226_v22  ;;  %v246_v32 = vld [vmem:[#allocation5 + $0x58] sm:$0xff]  ;;  %v247_v33 = vld [vmem:[#allocation5 + $0x60] sm:$0xff]  ;;  %v248_v35 = vld [vmem:[#allocation5 + $0x68] sm:$0xff]  ;;  %p2934_p4 = scmp.ne.s32.totalorder %s3653_s10, %s2933_s8  ;;  %s3009_s25 = smov [#allocation7]  }
  0x5b   : > { %2409 = vmatpush3.bf16.msra.mxu0 %v3200_v10  ;;  %2601 = vmatpush3.bf16.msra.mxu1 %v3200_v10  ;;  %v3230_v23 = vsub.f32 %v3211_v16, %v3216_v17  ;;  %v3248_v28 = vpack.c.bf16 %v273_v20, %v270_v19  ;;  %v249_v36 = vld [vmem:[#allocation5 + $0x70] sm:$0xff]  ;;  %v250_v37 = vld [vmem:[#allocation5 + $0x78] sm:$0xff]  ;;  %v3257_v38 = vand.u32 4294901760, %v3240_v27  ;;  %v3259_v39 = vsub.f32 %v237_v2, %v258_v6  ;;  %s2937_s14 = sshll.u32 %s3009_s25, 4  ;;  %s2938_s14 = int_to_ptr.vmem [resolvable:$false] %s2937_s14 }
  0x5c   : > { %2411 = vmatprep.subr.bf16.mxu0 %v3203_v13  ;;  %2603 = vmatprep.subr.bf16.mxu1 %v3203_v13  ;;  %v355_v41 = vand.u32 4294901760, %v3235_v25  ;;  %v362_v42 = vand.u32 4294901760, %v3237_v26  ;;  %v3266_v43 = vpack.c.bf16 %v279_v30, %v276_v29  ;;  %v282_v44 = vand.u32 4294901760, %v245_v31  ;;  %p2935_p6 = pnand %p2934_p4, %p3131_p12  ;;  %s2939_s20 = scalar_lea.vmem %s2938_s14, 512 }
  0x5d   : > { %v334_v24 = vand.u32 4294901760, %v3230_v23  ;;  %v285_v45 = vand.u32 4294901760, %v246_v32  ;;  %v288_v46 = vand.u32 4294901760, %v247_v33  ;;  %v291_v47 = vand.u32 4294901760, %v248_v35  ;;  %p2940_p10 = scmp.lt.s32.totalorder %s3653_s10, %s2938_s14  ;;  %p2941_p13 = scmp.lt.s32.totalorder %s2939_s20, %s2933_s8 }
  0x5e   : > { %v294_v48 = vand.u32 4294901760, %v249_v36  ;;  %v297_v49 = vand.u32 4294901760, %v250_v37  ;;  %v3271_v50 = vsub.f32 %v3240_v27, %v3257_v38  ;;  %v369_v51 = vand.u32 4294901760, %v3259_v39  ;;  %p2936_p8 = pneg %p2935_p6 }
  0x5f   : > { %2413 = vmatpush3.bf16.msra.mxu0 %v3203_v13  ;;  %2605 = vmatpush3.bf16.msra.mxu1 %v3203_v13  ;;  %v335_v34 = vsub.f32 %v3230_v23, %v334_v24  ;;  %v3274_v52 = vsub.f32 %v238_v5, %v261_v9  ;;  %v3276_v53 = vsub.f32 %v239_v7, %v264_v11  ;;  %p2942_p3 = por %p2941_p13, %p2940_p10 }
  0x60   : > { %2415 = vmatprep.subr.bf16.mxu0 %v3220_v18  ;;  %2607 = vmatprep.subr.bf16.mxu1 %v3220_v18  ;;  %v356_v54 = vsub.f32 %v3235_v25, %v355_v41  ;;  %v363_v55 = vsub.f32 %v3237_v26, %v362_v42  ;;  %v3286_v56 = vsub.f32 %v3198_v8, %v267_v12  ;;  %v344_v60 = vand.u32 4294901760, %v3271_v50 }
  0x61   : > { %v336_v40 = vand.u32 4294901760, %v335_v34  ;;  %v3290_v57 = vpack.c.bf16 %v285_v45, %v282_v44  ;;  %v3293_v58 = vpack.c.bf16 %v291_v47, %v288_v46  ;;  %v3295_v59 = vpack.c.bf16 %v297_v49, %v294_v48  ;;  %p2943_p7 = pnand %p2942_p3, %p2936_p8 }
  0x62   : > { %v370_v61 = vsub.f32 %v3259_v39, %v369_v51  ;;  %v376_v62 = vand.u32 4294901760, %v3274_v52  ;;  %v383_v63 = vand.u32 4294901760, %v3276_v53  ;;  %v357_v0 = vand.u32 4294901760, %v356_v54 }
  0x63   : > { %2417 = vmatpush3.bf16.msra.mxu0 %v3220_v18  ;;  %2609 = vmatpush3.bf16.msra.mxu1 %v3220_v18  ;;  %v364_v1 = vand.u32 4294901760, %v363_v55  ;;  %v390_v2 = vand.u32 4294901760, %v3286_v56  ;;  %v3306_v3 = vsub.f32 %v3205_v14, %v270_v19  ;;  %v3313_v4 = vsub.f32 %v3207_v15, %v273_v20 }
  0x64   : > { %2419 = vmatprep.subr.bf16.mxu0 %v3248_v28  ;;  %2611 = vmatprep.subr.bf16.mxu1 %v3248_v28  ;;  %v3316_v5 = vsub.f32 %v3224_v21, %v276_v29  ;;  %v3319_v6 = vsub.f32 %v3226_v22, %v279_v30  ;;  %v3322_v7 = vsub.f32 %v245_v31, %v282_v44 }
  0x65   : > { %2018 = vmatprep.mubr.f32.mxu0 %v336_v40  ;;  %v3324_v8 = vsub.f32 %v246_v32, %v285_v45  ;;  %v3326_v9 = vsub.f32 %v247_v33, %v288_v46  ;;  %v3328_v11 = vsub.f32 %v248_v35, %v291_v47  ;;  %v377_v12 = vsub.f32 %v3274_v52, %v376_v62 }
  0x66   : > { %v384_v14 = vsub.f32 %v3276_v53, %v383_v63  ;;  %v3332_v15 = vsub.f32 %v249_v36, %v294_v48  ;;  %v3334_v19 = vsub.f32 %v250_v37, %v297_v49  ;;  %v3337_v20 = vpack.c.bf16 %v364_v1, %v357_v0 }
  0x67   : > { %2421 = vmatpush3.bf16.msra.mxu0 %v3248_v28  ;;  %2613 = vmatpush3.bf16.msra.mxu1 %v3248_v28  ;;  %v345_v21 = vsub.f32 %v3271_v50, %v344_v60  ;;  %v391_v22 = vsub.f32 %v3286_v56, %v390_v2  ;;  %v397_v29 = vand.u32 4294901760, %v3306_v3  ;;  %v404_v30 = vand.u32 4294901760, %v3313_v4 }
  0x68   : > { %2423 = vmatprep.subr.bf16.mxu0 %v3266_v43  ;;  %2615 = vmatprep.subr.bf16.mxu1 %v3266_v43  ;;  %v411_v31 = vand.u32 4294901760, %v3316_v5  ;;  %v418_v32 = vand.u32 4294901760, %v3319_v6  ;;  %v425_v33 = vand.u32 4294901760, %v3322_v7  ;;  %v432_v34 = vand.u32 4294901760, %v3324_v8 }
  0x69   : > { %v439_v35 = vand.u32 4294901760, %v3326_v9  ;;  %v446_v36 = vand.u32 4294901760, %v3328_v11  ;;  %v453_v37 = vand.u32 4294901760, %v3332_v15  ;;  %v460_v40 = vand.u32 4294901760, %v3334_v19 }
  0x6a   : > { %v3360_v44 = vpack.c.bf16 %v362_v42, %v355_v41  ;;  %v3362_v45 = vpack.c.bf16 %v376_v62, %v369_v51  ;;  %v371_v46 = vand.u32 4294901760, %v370_v61  ;;  %v3365_v47 = vpack.c.bf16 %v390_v2, %v383_v63 }
  0x6b   : > { %2425 = vmatpush3.bf16.msra.mxu0 %v3266_v43  ;;  %2617 = vmatpush3.bf16.msra.mxu1 %v3266_v43  ;;  %v3367_v48 = vpack.c.bf16 %v404_v30, %v397_v29  ;;  %v3369_v49 = vpack.c.bf16 %v418_v32, %v411_v31  ;;  %v378_v54 = vand.u32 4294901760, %v377_v12  ;;  %v3373_v55 = vpack.c.bf16 %v432_v34, %v425_v33 }
  0x6c   : > { %2427 = vmatprep.subr.bf16.mxu0 %v3290_v57  ;;  %2619 = vmatprep.subr.bf16.mxu1 %v3290_v57  ;;  %v3375_v41 = vpack.c.bf16 %v446_v36, %v439_v35  ;;  %v3377_v42 = vpack.c.bf16 %v460_v40, %v453_v37  ;;  %v346_v51 = vand.u32 4294901760, %v345_v21  ;;  %v385_v61 = vand.u32 4294901760, %v384_v14 }
  0x6d   : > { %v392_v62 = vand.u32 4294901760, %v391_v22  ;;  %v3383_v63 = vpack.c.bf16 %v378_v54, %v371_v46  ;;  %v398_v0 = vsub.f32 %v3306_v3, %v397_v29  ;;  %v405_v1 = vsub.f32 %v3313_v4, %v404_v30 }
  0x6e   : > { %v412_v21 = vsub.f32 %v3316_v5, %v411_v31  ;;  %v419_v22 = vsub.f32 %v3319_v6, %v418_v32  ;;  %v426_v29 = vsub.f32 %v3322_v7, %v425_v33  ;;  %v447_v33 = vsub.f32 %v3328_v11, %v446_v36 }
  0x6f   : > { %2429 = vmatpush3.bf16.msra.mxu0 %v3290_v57  ;;  %2621 = vmatpush3.bf16.msra.mxu1 %v3290_v57  ;;  %v3389_v2 = vpack.c.bf16 %v392_v62, %v385_v61  ;;  %v399_v12 = vand.u32 4294901760, %v398_v0  ;;  %v406_v14 = vand.u32 4294901760, %v405_v1  ;;  %v440_v61 = vsub.f32 %v3326_v9, %v439_v35 }
  0x70   : > { %2431 = vmatprep.subr.bf16.mxu0 %v3293_v58  ;;  %2623 = vmatprep.subr.bf16.mxu1 %v3293_v58  ;;  %v413_v46 = vand.u32 4294901760, %v412_v21  ;;  %v420_v54 = vand.u32 4294901760, %v419_v22  ;;  %v427_v32 = vand.u32 4294901760, %v426_v29  ;;  %v461_v35 = vsub.f32 %v3334_v19, %v460_v40 }
  0x71   : > { %v3398_v30 = vpack.c.bf16 %v406_v14, %v399_v12  ;;  %v441_v0 = vand.u32 4294901760, %v440_v61  ;;  %v454_v12 = vsub.f32 %v3332_v15, %v453_v37  ;;  %v3425_v37 = vpack.c.bf16 %v3237_v26, %v3235_v25 }
  0x72   : > { %v3404_v31 = vpack.c.bf16 %v420_v54, %v413_v46  ;;  %v462_v36 = vand.u32 4294901760, %v461_v35  ;;  %v3431_v40 = vpack.c.bf16 %v3274_v52, %v3259_v39  ;;  %v3439_v25 = vpack.c.bf16 %v3286_v56, %v3276_v53 }
  0x73   : > { %2433 = vmatpush3.bf16.msra.mxu0 %v3293_v58  ;;  %2625 = vmatpush3.bf16.msra.mxu1 %v3293_v58  ;;  %v455_v21 = vand.u32 4294901760, %v454_v12  ;;  %v3445_v26 = vpack.c.bf16 %v3313_v4, %v3306_v3  ;;  %v3451_v39 = vpack.c.bf16 %v3319_v6, %v3316_v5  ;;  %v3457_v52 = vpack.c.bf16 %v3324_v8, %v3322_v7 }
  0x74   : > { %2435 = vmatprep.subr.bf16.mxu0 %v3295_v59  ;;  %2627 = vmatprep.subr.bf16.mxu1 %v3295_v59  ;;  %v3463_v53 = vpack.c.bf16 %v3328_v11, %v3326_v9  ;;  %v3469_v56 = vpack.c.bf16 %v3334_v19, %v3332_v15 }
  0x75   : > { %v3419_v22 = vpack.c.bf16 %v462_v36, %v455_v21 }
  0x77   : > { %2437 = vmatpush3.bf16.msra.mxu0 %v3295_v59  ;;  %2629 = vmatpush3.bf16.msra.mxu1 %v3295_v59 }
  0x78   : > { %2439 = vmatprep.subr.bf16.mxu0 %v3337_v20  ;;  %2631 = vmatprep.subr.bf16.mxu1 %v3337_v20 }
  0x7a   : > { %2019 = vmatmul.mubr.f32.vlgmr.msra.gmra.mrb[0].mxu0 %v346_v51  ;;  %v433_v51 = vsub.f32 %v3324_v8, %v432_v34  ;;  %v448_v34 = vand.u32 4294901760, %v447_v33 }
  0x7b   : > { %2441 = vmatpush3.bf16.msra.mxu0 %v3337_v20  ;;  %2053 = vmatprep.mubr.f32.mxu0 %v3216_v17 }
  0x7c   : > { %2443 = vmatprep.subr.bf16.mxu0 %v3383_v63  ;;  %v434_v62 = vand.u32 4294901760, %v433_v51  ;;  %v3415_v14 = vpack.c.bf16 %v448_v34, %v441_v0 }
  0x7e   : > { %v3409_v1 = vpack.c.bf16 %v434_v62, %v427_v32 }
  0x7f   : > { %2445 = vmatpush3.bf16.msra.mxu0 %v3383_v63 }
  0x80   : > { %2447 = vmatprep.subr.bf16.mxu0 %v3389_v2 }
  0x83   : > { %2449 = vmatpush3.bf16.msra.mxu0 %v3389_v2 }
  0x84   : > { %2451 = vmatprep.subr.bf16.mxu0 %v3398_v30 }
  0x87   : > { %2453 = vmatpush3.bf16.msra.mxu0 %v3398_v30 }
  0x88   : > { %2455 = vmatprep.subr.bf16.mxu0 %v3404_v31 }
  0x8b   : > { %2457 = vmatpush3.bf16.msra.mxu0 %v3404_v31 }
  0x8c   : > { %2459 = vmatprep.subr.bf16.mxu0 %v3409_v1 }
  0x8f   : > { %2461 = vmatpush3.bf16.msra.mxu0 %v3409_v1 }
  0x90   : > { %2463 = vmatprep.subr.bf16.mxu0 %v3415_v14 }
  0x93   : > { %2465 = vmatpush3.bf16.msra.mxu0 %v3415_v14 }
  0x94   : > { %2467 = vmatprep.subr.bf16.mxu0 %v3419_v22 }
  0x97   : > { %2469 = vmatpush3.bf16.msra.mxu0 %v3419_v22 }
  0x98   : > { %2471 = vmatprep.subr.bf16.mxu0 %v3425_v37 }
  0x9a   : > { %2054 = vmatmul.mubr.f32.vlgmr.msra.gmra.mrb[0].mxu0 %v3257_v38 }
  0x9b   : > { %2473 = vmatpush3.bf16.msra.mxu0 %v3425_v37  ;;  %2088 = vmatprep.mubr.f32.mxu0 %v3230_v23 }
  0x9c   : > { %2475 = vmatprep.subr.bf16.mxu0 %v3431_v40 }
  0x9f   : > { %2477 = vmatpush3.bf16.msra.mxu0 %v3431_v40 }
  0xa0   : > { %2479 = vmatprep.subr.bf16.mxu0 %v3439_v25 }
  0xa3   : > { %2481 = vmatpush3.bf16.msra.mxu0 %v3439_v25 }
  0xa4   : > { %2483 = vmatprep.subr.bf16.mxu0 %v3445_v26 }
  0xa7   : > { %2485 = vmatpush3.bf16.msra.mxu0 %v3445_v26 }
  0xa8   : > { %2487 = vmatprep.subr.bf16.mxu0 %v3451_v39 }
  0xab   : > { %2489 = vmatpush3.bf16.msra.mxu0 %v3451_v39 }
  0xac   : > { %2491 = vmatprep.subr.bf16.mxu0 %v3457_v52 }
  0xaf   : > { %2493 = vmatpush3.bf16.msra.mxu0 %v3457_v52 }
  0xb0   : > { %2495 = vmatprep.subr.bf16.mxu0 %v3463_v53 }
  0xb3   : > { %2497 = vmatpush3.bf16.msra.mxu0 %v3463_v53 }
  0xb4   : > { %2499 = vmatprep.subr.bf16.mxu0 %v3469_v56 }
  0xb7   : > { %2501 = vmatpush3.bf16.msra.mxu0 %v3469_v56 }
  0xb8   : > { %2503 = vmatprep.subr.bf16.mxu0 %v3200_v10 }
  0xba   : > { %2089 = vmatmul.mubr.f32.vlgmr.msra.gmra.mrb[0].mxu0 %v3271_v50 }
  0xbb   : > { %2505 = vmatpush3.bf16.msra.mxu0 %v3200_v10  ;;  %2123 = vmatprep.mubr.f32.mxu0 %v334_v24 }
  0xbc   : > { %2507 = vmatprep.subr.bf16.mxu0 %v3203_v13 }
  0xbf   : > { %2509 = vmatpush3.bf16.msra.mxu0 %v3203_v13 }
  0xc0   : > { %2511 = vmatprep.subr.bf16.mxu0 %v3220_v18 }
  0xc3   : > { %2513 = vmatpush3.bf16.msra.mxu0 %v3220_v18 }
  0xc4   : > { %2515 = vmatprep.subr.bf16.mxu0 %v3248_v28 }
  0xc7   : > { %2517 = vmatpush3.bf16.msra.mxu0 %v3248_v28 }
  0xc8   : > { %2519 = vmatprep.subr.bf16.mxu0 %v3266_v43 }
  0xcb   : > { %2521 = vmatpush3.bf16.msra.mxu0 %v3266_v43 }
  0xcc   : > { %2523 = vmatprep.subr.bf16.mxu0 %v3290_v57 }
  0xcf   : > { %2525 = vmatpush3.bf16.msra.mxu0 %v3290_v57 }
  0xd0   : > { %2527 = vmatprep.subr.bf16.mxu0 %v3293_v58 }
  0xd3   : > { %2529 = vmatpush3.bf16.msra.mxu0 %v3293_v58 }
  0xd4   : > { %2531 = vmatprep.subr.bf16.mxu0 %v3295_v59 }
  0xd7   : > { %2533 = vmatpush3.bf16.msra.mxu0 %v3295_v59 }
  0xd8   : > { %2535 = vmatprep.subr.bf16.mxu0 %v3360_v44 }
  0xda   : > { %2124 = vmatmul.mubr.f32.vlgmr.msra.gmra.mrb[0].mxu0 %v344_v60 }
  0xdb   : > { %2537 = vmatpush3.bf16.msra.mxu0 %v3360_v44  ;;  %2158 = vmatprep.mubr.f32.mxu0 %v3216_v17 }
  0xdc   : > { %2539 = vmatprep.subr.bf16.mxu0 %v3362_v45 }
  0xdf   : > { %2541 = vmatpush3.bf16.msra.mxu0 %v3362_v45 }
  0xe0   : > { %2543 = vmatprep.subr.bf16.mxu0 %v3365_v47 }
  0xe3   : > { %2545 = vmatpush3.bf16.msra.mxu0 %v3365_v47 }
  0xe4   : > { %2547 = vmatprep.subr.bf16.mxu0 %v3367_v48 }
  0xe7   : > { %2549 = vmatpush3.bf16.msra.mxu0 %v3367_v48 }
  0xe8   : > { %2551 = vmatprep.subr.bf16.mxu0 %v3369_v49 }
  0xeb   : > { %2553 = vmatpush3.bf16.msra.mxu0 %v3369_v49 }
  0xec   : > { %2555 = vmatprep.subr.bf16.mxu0 %v3373_v55 }
  0xef   : > { %2557 = vmatpush3.bf16.msra.mxu0 %v3373_v55 }
  0xf0   : > { %2559 = vmatprep.subr.bf16.mxu0 %v3375_v41 }
  0xf3   : > { %2561 = vmatpush3.bf16.msra.mxu0 %v3375_v41 }
  0xf4   : > { %2563 = vmatprep.subr.bf16.mxu0 %v3377_v42 }
  0xf7   : > { %2565 = vmatpush3.bf16.msra.mxu0 %v3377_v42 }
  0xf8   : > { %2567 = vmatprep.subr.bf16.mxu0 %v3200_v10 }
  0xfa   : > { %2159 = vmatmul.mubr.f32.vlgmr.msra.gmra.mrb[0].mxu0 %v3257_v38 }
  0xfb   : > { %2569 = vmatpush3.bf16.msra.mxu0 %v3200_v10  ;;  %2193 = vmatprep.mubr.f32.mxu0 %v3216_v17 }
  0xfc   : > { %2571 = vmatprep.subr.bf16.mxu0 %v3203_v13 }
  0xff   : > { %2573 = vmatpush3.bf16.msra.mxu0 %v3203_v13 }
 0x100   : > { %2575 = vmatprep.subr.bf16.mxu0 %v3220_v18 }
 0x103   : > { %2577 = vmatpush3.bf16.msra.mxu0 %v3220_v18 }
 0x104   : > { %2579 = vmatprep.subr.bf16.mxu0 %v3248_v28 }
 0x107   : > { %2581 = vmatpush3.bf16.msra.mxu0 %v3248_v28 }
 0x108   : > { %2583 = vmatprep.subr.bf16.mxu0 %v3266_v43 }
 0x10b   : > { %2585 = vmatpush3.bf16.msra.mxu0 %v3266_v43 }
 0x10c   : > { %2587 = vmatprep.subr.bf16.mxu0 %v3290_v57 }
 0x10f   : > { %2589 = vmatpush3.bf16.msra.mxu0 %v3290_v57 }
 0x110   : > { %2591 = vmatprep.subr.bf16.mxu0 %v3293_v58 }
 0x113   : > { %2593 = vmatpush3.bf16.msra.mxu0 %v3293_v58 }
 0x114   : > { %2595 = vmatprep.subr.bf16.mxu0 %v3295_v59 }
 0x117   : > { %2597 = vmatpush3.bf16.msra.mxu0 %v3295_v59 }
 0x11a   : > { %2194 = vmatmul.mubr.f32.vlgmr.msra.gmra.mrb[0].mxu0 %v3257_v38 }
 0x1ed   : > { %v2195_v17 = vpop.f32.mrb[0].mxu0 }
 0x1ee   : > { %v936_v23 = vmul.f32 0.03125, %v2195_v17  ;;  %v925_v24 = vpop.f32.mrb[1].mxu0 }
 0x1ef   : > { %v935_v50 = vmul.f32 0.03125, %v925_v24 }
 0x1f0   : > { %v3532_v60 = vsub.f32 %v3240_v27, %v936_v23 }
 0x1f1   : > { %v3535_v3 = vsub.f32 %v3211_v16, %v935_v50 }
 0x1f2   : > { %v940_v4 = vmul.f32 %v3532_v60, %v3532_v60 }
 0x1f3   : > { %v939_v5 = vmul.f32 %v3535_v3, %v3535_v3 }
 0x1f4   : > { %v3541_v6 = vand.u32 4294901760, %v940_v4 }
 0x1f5   : > { %v3543_v7 = vand.u32 4294901760, %v939_v5 }
 0x1f6   : > { %v3546_v38 = vsub.f32 %v940_v4, %v3541_v6 }
 0x1f7   : > { %v1023_v8 = vsub.f32 %v939_v5, %v3543_v7 }
 0x1f8   : > { %v1034_v27 = vand.u32 4294901760, %v3546_v38 }
 0x1f9   : > { %v1024_v9 = vand.u32 4294901760, %v1023_v8 }
 0x1fa   : > { %v1035_v16 = vsub.f32 %v3546_v38, %v1034_v27 }
 0x1fb   : > { %v1025_v11 = vsub.f32 %v1023_v8, %v1024_v9 }
 0x1fc   : > { %v1036_v19 = vand.u32 4294901760, %v1035_v16 }
 0x1fd   : > { %v1026_v15 = vand.u32 4294901760, %v1025_v11 }
 0x1ff   : > { %2228 = vmatprep.mubr.f32.mxu1 %v1026_v15 }
 0x200   : > { %2229 = vmatmul.mubr.f32.vlgmr.msra.gmra.mrb[0].mxu1 %v1036_v19 }
 0x201   : > { %2633 = vmatpush3.bf16.msra.mxu1 %v3337_v20  ;;  %2263 = vmatprep.mubr.f32.mxu1 %v3543_v7 }
 0x202   : > { %2635 = vmatprep.subr.bf16.mxu1 %v3383_v63 }
 0x205   : > { %2637 = vmatpush3.bf16.msra.mxu1 %v3383_v63 }
 0x206   : > { %2639 = vmatprep.subr.bf16.mxu1 %v3389_v2 }
 0x209   : > { %2641 = vmatpush3.bf16.msra.mxu1 %v3389_v2 }
 0x20a   : > { %2643 = vmatprep.subr.bf16.mxu1 %v3398_v30 }
 0x20d   : > { %2645 = vmatpush3.bf16.msra.mxu1 %v3398_v30 }
 0x20e   : > { %2647 = vmatprep.subr.bf16.mxu1 %v3404_v31 }
 0x211   : > { %2649 = vmatpush3.bf16.msra.mxu1 %v3404_v31 }
 0x212   : > { %2651 = vmatprep.subr.bf16.mxu1 %v3409_v1 }
 0x215   : > { %2653 = vmatpush3.bf16.msra.mxu1 %v3409_v1 }
 0x216   : > { %2655 = vmatprep.subr.bf16.mxu1 %v3415_v14 }
 0x219   : > { %2657 = vmatpush3.bf16.msra.mxu1 %v3415_v14 }
 0x21a   : > { %2659 = vmatprep.subr.bf16.mxu1 %v3419_v22 }
 0x21d   : > { %2661 = vmatpush3.bf16.msra.mxu1 %v3419_v22 }
 0x21e   : > { %2663 = vmatprep.subr.bf16.mxu1 %v3425_v37 }
 0x220   : > { %2264 = vmatmul.mubr.f32.vlgmr.msra.gmra.mrb[0].mxu1 %v3541_v6 }
 0x221   : > { %2665 = vmatpush3.bf16.msra.mxu1 %v3425_v37  ;;  %2298 = vmatprep.mubr.f32.mxu1 %v1023_v8 }
 0x222   : > { %2667 = vmatprep.subr.bf16.mxu1 %v3431_v40 }
 0x225   : > { %2669 = vmatpush3.bf16.msra.mxu1 %v3431_v40 }
 0x226   : > { %2671 = vmatprep.subr.bf16.mxu1 %v3439_v25 }
 0x229   : > { %2673 = vmatpush3.bf16.msra.mxu1 %v3439_v25 }
 0x22a   : > { %2675 = vmatprep.subr.bf16.mxu1 %v3445_v26 }
 0x22d   : > { %2677 = vmatpush3.bf16.msra.mxu1 %v3445_v26 }
 0x22e   : > { %2679 = vmatprep.subr.bf16.mxu1 %v3451_v39 }
 0x231   : > { %2681 = vmatpush3.bf16.msra.mxu1 %v3451_v39 }
 0x232   : > { %2683 = vmatprep.subr.bf16.mxu1 %v3457_v52 }
 0x235   : > { %2685 = vmatpush3.bf16.msra.mxu1 %v3457_v52 }
 0x236   : > { %2687 = vmatprep.subr.bf16.mxu1 %v3463_v53 }
 0x239   : > { %2689 = vmatpush3.bf16.msra.mxu1 %v3463_v53 }
 0x23a   : > { %2691 = vmatprep.subr.bf16.mxu1 %v3469_v56 }
 0x23d   : > { %2693 = vmatpush3.bf16.msra.mxu1 %v3469_v56 }
 0x23e   : > { %2695 = vmatprep.subr.bf16.mxu1 %v3200_v10 }
 0x240   : > { %2299 = vmatmul.mubr.f32.vlgmr.msra.gmra.mrb[0].mxu1 %v3546_v38 }
 0x241   : > { %2697 = vmatpush3.bf16.msra.mxu1 %v3200_v10  ;;  %2333 = vmatprep.mubr.f32.mxu1 %v1024_v9 }
 0x242   : > { %2699 = vmatprep.subr.bf16.mxu1 %v3203_v13 }
 0x245   : > { %2701 = vmatpush3.bf16.msra.mxu1 %v3203_v13 }
 0x246   : > { %2703 = vmatprep.subr.bf16.mxu1 %v3220_v18 }
 0x249   : > { %2705 = vmatpush3.bf16.msra.mxu1 %v3220_v18 }
 0x24a   : > { %2707 = vmatprep.subr.bf16.mxu1 %v3248_v28 }
 0x24d   : > { %2709 = vmatpush3.bf16.msra.mxu1 %v3248_v28 }
 0x24e   : > { %2711 = vmatprep.subr.bf16.mxu1 %v3266_v43 }
 0x251   : > { %2713 = vmatpush3.bf16.msra.mxu1 %v3266_v43 }
 0x252   : > { %2715 = vmatprep.subr.bf16.mxu1 %v3290_v57 }
 0x255   : > { %2717 = vmatpush3.bf16.msra.mxu1 %v3290_v57 }
 0x256   : > { %2719 = vmatprep.subr.bf16.mxu1 %v3293_v58 }
 0x259   : > { %2721 = vmatpush3.bf16.msra.mxu1 %v3293_v58 }
 0x25a   : > { %2723 = vmatprep.subr.bf16.mxu1 %v3295_v59 }
 0x25d   : > { %2725 = vmatpush3.bf16.msra.mxu1 %v3295_v59 }
 0x25e   : > { %2727 = vmatprep.subr.bf16.mxu1 %v3360_v44 }
 0x260   : > { %2334 = vmatmul.mubr.f32.vlgmr.msra.gmra.mrb[0].mxu1 %v1034_v27 }
 0x261   : > { %2729 = vmatpush3.bf16.msra.mxu1 %v3360_v44  ;;  %2368 = vmatprep.mubr.f32.mxu1 %v3543_v7 }
 0x262   : > { %2731 = vmatprep.subr.bf16.mxu1 %v3362_v45 }
 0x265   : > { %2733 = vmatpush3.bf16.msra.mxu1 %v3362_v45  ;;  %v1762_v45 = vld [vmem:[%s3700_s3] ss:$0 sm:$0xff] }
 0x266   : > { %2735 = vmatprep.subr.bf16.mxu1 %v3365_v47 }
 0x269   : > { %2737 = vmatpush3.bf16.msra.mxu1 %v3365_v47 }
 0x26a   : > { %2739 = vmatprep.subr.bf16.mxu1 %v3367_v48 }
 0x26d   : > { %2741 = vmatpush3.bf16.msra.mxu1 %v3367_v48 }
 0x26e   : > { %2743 = vmatprep.subr.bf16.mxu1 %v3369_v49 }
 0x271   : > { %2745 = vmatpush3.bf16.msra.mxu1 %v3369_v49 }
 0x272   : > { %2747 = vmatprep.subr.bf16.mxu1 %v3373_v55 }
 0x275   : > { %2749 = vmatpush3.bf16.msra.mxu1 %v3373_v55 }
 0x276   : > { %2751 = vmatprep.subr.bf16.mxu1 %v3375_v41 }
 0x279   : > { %2753 = vmatpush3.bf16.msra.mxu1 %v3375_v41 }
 0x27a   : > { %2755 = vmatprep.subr.bf16.mxu1 %v3377_v42 }
 0x27d   : > { %2757 = vmatpush3.bf16.msra.mxu1 %v3377_v42 }
 0x27e   : > { %2759 = vmatprep.subr.bf16.mxu1 %v3200_v10 }
 0x280   : > { %2369 = vmatmul.mubr.f32.vlgmr.msra.gmra.mrb[0].mxu1 %v3541_v6 }
 0x281   : > { %2761 = vmatpush3.bf16.msra.mxu1 %v3200_v10  ;;  %2403 = vmatprep.mubr.f32.mxu1 %v3543_v7 }
 0x282   : > { %2763 = vmatprep.subr.bf16.mxu1 %v3203_v13 }
 0x285   : > { %2765 = vmatpush3.bf16.msra.mxu1 %v3203_v13 }
 0x286   : > { %2767 = vmatprep.subr.bf16.mxu1 %v3220_v18 }
 0x289   : > { %2769 = vmatpush3.bf16.msra.mxu1 %v3220_v18 }
 0x28a   : > { %2771 = vmatprep.subr.bf16.mxu1 %v3248_v28 }
 0x28d   : > { %2773 = vmatpush3.bf16.msra.mxu1 %v3248_v28 }
 0x28e   : > { %2775 = vmatprep.subr.bf16.mxu1 %v3266_v43 }
 0x291   : > { %2777 = vmatpush3.bf16.msra.mxu1 %v3266_v43 }
 0x292   : > { %2779 = vmatprep.subr.bf16.mxu1 %v3290_v57 }
 0x295   : > { %2781 = vmatpush3.bf16.msra.mxu1 %v3290_v57 }
 0x296   : > { %2783 = vmatprep.subr.bf16.mxu1 %v3293_v58 }
 0x299   : > { %2785 = vmatpush3.bf16.msra.mxu1 %v3293_v58  ;;  %v1761_v58 = vld [vmem:[%s3699_s2] ss:$0 sm:$0xff] }
 0x29a   : > { %2787 = vmatprep.subr.bf16.mxu1 %v3295_v59 }
 0x29d   : > { %2789 = vmatpush3.bf16.msra.mxu1 %v3295_v59 }
 0x2a0   : > { %2404 = vmatmul.mubr.f32.vlgmr.msra.gmra.mrb[0].mxu1 %v3541_v6 }
 0x373   : > { %v2405_v10 = vpop.f32.mrb[0].mxu1 }
 0x374   : > { %v1626_v13 = vmul.f32 0.03125, %v2405_v10  ;;  %v1615_v18 = vpop.f32.mrb[1].mxu1 }
 0x375   : > { %v1625_v28 = vmul.f32 0.03125, %v1615_v18 }
 0x376   : > { %v1628_v43 = vadd.f32 1e-05, %v1626_v13 }
 0x377   : > { %v1627_v20 = vadd.f32 1e-05, %v1625_v28 }
 0x378   : > { %2871 = vrsqrt.f32 %v1628_v43 }
 0x379   : > { %2873 = vrsqrt.f32 %v1627_v20 }
 0x382   : > { %v2872_v57 = vpop.eup %2871 }
 0x383   : > { %v2874_v44 = vpop.eup %2873  ;;  %v1632_v59 = vmul.f32 %v2872_v57, %v3532_v60 }
 0x384   : > { %v1631_v47 = vmul.f32 %v2874_v44, %v3535_v3 }
 0x385   : > { %v1641_v48 = vmul.f32 %v1761_v58, %v1632_v59 }
 0x386   : > { %v1640_v49 = vmul.f32 %v1761_v58, %v1631_v47 }
 0x387   : > { %v1650_v55 = vadd.f32 %v1762_v45, %v1641_v48 }
 0x388   : > { %v1649_v41 = vadd.f32 %v1762_v45, %v1640_v49 }
 0x389   : > { %1652 = vst [vmem:[%s230_s28 + $0x8] sm:$0xff] %v1650_v55 }
 0x38a   : > { %1651 = vst [vmem:[%s230_s28] sm:$0xff] %v1649_v41 }
 0x38b   : > { %2946 = shalt.err (!%p2943_p7)
}
 0x38c   : > { %s2947_s5 = scalar_lea.hbm %s3651_s26, 256  ;;  %s2951_s23 = scalar_lea.hbm %s3701_s4, 512 }
 0x38d   : > { %p2948_p9 = scmp.ne.s32.totalorder %s3651_s26, %s2947_s5  ;;  %p2952_p5 = scmp.lt.u32.totalorder %s3651_s26, %s3701_s4 }
 0x38e   : > { %p2953_p11 = scmp.lt.u32.totalorder %s2951_s23, %s2947_s5  ;;  %p2955_p4 = scmp.lt.u32.totalorder %s2947_s5, %s3651_s26 }
 0x38f   : > { %p2949_p1 = pnand %p2948_p9, %p3131_p12 }
 0x390   : > { %p2954_p2 = por %p2953_p11, %p2952_p5 }
 0x391   : > { %p2950_p0 = pneg %p2949_p1 }
 0x392   : > { %p2956_p6 = por %p2955_p4, %p2954_p2 }
 0x394   : > { %p2957_p8 = pnand %p2956_p6, %p2950_p0 }
 0x396   : > { %2960 = shalt.err (!%p2957_p8)
}
 0x397   : > { %s3010_s9 = smov 128   ;;  %s3011_s28 = smov 8  }
 0x398   : > { %2816 = dma.vmem_to_hbm [thread:$0]  (%p3131_p12), %s3653_s10, 256, %s3651_s26, %s1654_s19, %s3010_s9, %s3010_s9, %s3011_s28  }
 0x399 PF: > { %s1682_s6 = sand.u32 1, %s2991_s15   ;;  %p3716_p10 = scmp.ne.s32.totalorder %s3706_s22, 0 }
 0x39a   : > { %p3717_p13 = scmp.ge.s32.totalorder %s3003_s18, 2  ;;  %s1683_s7 = scalar_lea.sflag [#allocation4], %s1682_s6 }
 0x39c   : > { %p2827_p3 = pnand %p3717_p13, %p3716_p10 }
 0x39e   : > { %2986 = dma.done.wait (!%p2827_p3), %s1683_s7, 256  }
 0x39f   : > { %2988 = vsyncadd (!%p2827_p3), %s1683_s7, 4294967040  ;;  %p18_p7 = scmp.ge.s32.totalorder %s3093_s27, 4   ;;  %s3718_s15 = smov %s2995_s16 }
 0x3a0   : > { %s3719_s16 = smov %s2999_s17  ;;  %s3720_s17 = smov %s3127_s24 }
 0x3a1   : > { %s3721_s18 = smov %s3093_s27  ;;  %20 = sbr.rel (!%p18_p7) target bundleno = 6 (0x6), region = 85 }
 0x3a8   :  { %1688 = vsyncpa [#allocation3], 1 }
 0x3a9   :  { %1690 = vsyncpa [#allocation3 + $0x1], 1 }
 0x3aa   :  { %1691 = vsyncpa [#allocation6], 1 }
 0x3ab   :  { %1692 = vsyncpa [#allocation4], 1 }
 0x3ac   :  { %1694 = vsyncpa [#allocation4 + $0x1], 1 }

</bundles_post_ra>
